<compile_context>
chip_gen: v7x
topology: tpu7x:2x2x1
jax: 0.10.0
libtpu: 0.0.40
codegen_flags: <defaults>
</compile_context>

<pallas_src>
import functools

import jax
import jax.numpy as jnp
from jax.experimental import pallas as pl
from jax.experimental.pallas import tpu as pltpu


def _round_up(x, m):
    return (x + m - 1) // m * m


def _gce_kernel(logits_ref, targets_ref, loss_ref, *, q):
    logits = logits_ref[...].astype(jnp.float32)            # (TN, C) f32
    tgt = targets_ref[...]                                   # (TN, 1) int32
    tn, c = logits.shape

    # Numerically stable log-softmax pieces (per row).
    m = jnp.max(logits, axis=-1, keepdims=True)              # (TN, 1)
    shifted = logits - m                                      # (TN, C)
    denom = jnp.sum(jnp.exp(shifted), axis=-1, keepdims=True)
    log_denom = jnp.log(denom)                                # (TN, 1)

    # Gather the target (shifted) logit without a dynamic gather.
    col = jax.lax.broadcasted_iota(jnp.int32, (tn, c), 1)     # (TN, C)
    shifted_t = jnp.sum(jnp.where(col == tgt, shifted, 0.0),
                        axis=-1, keepdims=True)               # (TN, 1)

    ce = log_denom - shifted_t                                 # -log p[target]
    # q * Yg**q == q * exp(q*(shifted_t - log_denom)) == q * exp(-q*ce):
    # one EUP exp instead of exp+log+pow, and no log(0) when p underflows.
    weight = q * jnp.exp(-q * ce)
    loss_col = ce * weight                                     # (TN, 1)

    # Column -> lane-dense row, 128 rows at a time: put the column on the
    # diagonal of a (128, 128) tile and reduce over sublanes.  Keeps the store
    # path unmasked and the output writeback lane-dense.
    eye = (jax.lax.broadcasted_iota(jnp.int32, (128, 128), 0)
           == jax.lax.broadcasted_iota(jnp.int32, (128, 128), 1))
    for g in range(tn // 128):
        piece = loss_col[g * 128:(g + 1) * 128, :]             # (128, 1)
        row = jnp.sum(jnp.where(eye, piece, 0.0), axis=0, keepdims=True)
        loss_ref[:, g * 128:(g + 1) * 128] = row               # (1, 128)


def _pick_tile_n(c, itemsize):
    """Row-tile size: big enough to amortize the ~0.35us per-grid-step
    overhead, small enough that the lane-padded, f32 working set stays well
    inside scoped VMEM on every generation (including v7x's 64 MiB)."""
    c_pad = _round_up(c, 128)
    # Per row: double-buffered input block (input dtype) + ~5 live f32
    # (tile_n, c_pad) temporaries (upcast, shifted, exp, iota, select).
    per_row = c_pad * (2 * itemsize + 5 * 4)
    rows = (16 * 1024 * 1024) // per_row
    rows = min(rows, 8192)
    rows = max(128, rows // 128 * 128)
    return rows


def generalized_ce_loss(logits, targets, q=0.7, tile_n=None):
    """logits: [N, C] float32/bfloat16, targets: [N] int -> loss: [N] float32."""
    n, c = logits.shape
    itemsize = jnp.dtype(logits.dtype).itemsize
    if tile_n is None:
        tile_n = _pick_tile_n(c, itemsize)
    tile_n = max(128, (tile_n // 128) * 128)

    # v7x has 2 TensorCores: make sure the "parallel" grid axis has >= 2 steps.
    if n >= 256:
        tile_n = min(tile_n, max(128, ((n // 2) // 128) * 128))
    # Keep every block within the array rows; only the tail block is partial.
    if n >= 128:
        tile_n = min(tile_n, (n // 128) * 128)

    targets2d = targets.astype(jnp.int32).reshape(n, 1)
    if n < 128:
        # Tiny batch: pad rows up to a single 128-row tile (negligible cost;
        # the large-N path never copies/pads the big logits tensor).
        pad = 128 - n
        logits = jnp.pad(logits, ((0, pad), (0, 0)))
        targets2d = jnp.pad(targets2d, ((0, pad), (0, 0)))
        n_rows, tile_n = 128, 128
    else:
        n_rows = n

    num_tiles = pl.cdiv(n_rows, tile_n)
    out_cols = num_tiles * tile_n

    # Honest VMEM budget: lane-padded input blocks x2 buffers + f32 temps + slack.
    c_pad = _round_up(c, 128)
    est = tile_n * c_pad * (2 * itemsize + 6 * 4) + (2 << 20)
    vmem_limit = int(min(32 << 20, max(16 << 20, est + (4 << 20))))

    kernel = functools.partial(_gce_kernel, q=q)
    loss_row = pl.pallas_call(
        kernel,
        out_shape=jax.ShapeDtypeStruct((1, out_cols), jnp.float32),
        grid_spec=pltpu.PrefetchScalarGridSpec(
            num_scalar_prefetch=0,
            grid=(num_tiles,),
            in_specs=[
                pl.BlockSpec((tile_n, c), lambda i: (i, 0)),
                pl.BlockSpec((tile_n, 1), lambda i: (i, 0)),
            ],
            out_specs=pl.BlockSpec((1, tile_n), lambda i: (0, i)),
        ),
        compiler_params=pltpu.CompilerParams(
            dimension_semantics=("parallel",),
            vmem_limit_bytes=vmem_limit,
        ),
    )(logits, targets2d)
    return loss_row[0, :n]


def _reference(logits, targets, q=0.7):
    logp = jax.nn.log_softmax(logits.astype(jnp.float32), axis=1)
    p = jnp.exp(logp)
    n = logits.shape[0]
    yg = p[jnp.arange(n), targets]
    ce = -logp[jnp.arange(n), targets]
    return ce * (yg ** q) * q


if __name__ == "__main__":
    key = jax.random.PRNGKey(0)
    k1, k2, k3, k4 = jax.random.split(key, 4)

    # Tiny batch (N < 128 -> single padded 128-row tile).
    N, C = 8, 32
    logits = jax.random.normal(k1, (N, C), dtype=jnp.float32)
    targets = jax.random.randint(k2, (N,), 0, C, dtype=jnp.int32)
    loss = generalized_ce_loss(logits, targets, q=0.7)
    jax.block_until_ready(loss)
    ref = _reference(logits, targets, q=0.7)
    assert loss.shape == (N,)
    assert jnp.allclose(loss, ref, atol=1e-5, rtol=1e-5), (loss, ref)

    # Multi-tile with a ragged tail (no host-side padding of logits).
    N2, C2 = 300, 32
    logits2 = jax.random.normal(k3, (N2, C2), dtype=jnp.float32)
    targets2 = jax.random.randint(k4, (N2,), 0, C2, dtype=jnp.int32)
    loss2 = generalized_ce_loss(logits2, targets2, q=0.7, tile_n=128)
    jax.block_until_ready(loss2)
    ref2 = _reference(logits2, targets2, q=0.7)
    assert loss2.shape == (N2,)
    assert jnp.allclose(loss2, ref2, atol=1e-5, rtol=1e-5), (loss2, ref2)

    # bf16 logits path (halves HBM traffic of the dominant input stream).
    loss_bf16 = generalized_ce_loss(logits2.astype(jnp.bfloat16), targets2, q=0.7)
    jax.block_until_ready(loss_bf16)
    ref_bf16 = _reference(logits2.astype(jnp.bfloat16), targets2, q=0.7)
    assert jnp.allclose(loss_bf16, ref_bf16, atol=1e-4, rtol=1e-4), (loss_bf16, ref_bf16)

    print("KERNEL_OK")
</pallas_src>

<mosaic_0001>
module attributes {stable_mosaic.version = 11 : i64} {
  func.func @_gce_kernel(%arg0: i32, %arg1: memref<128x32xf32, #tpu.memory_space<vmem>>, %arg2: memref<128x1xi32, #tpu.memory_space<vmem>>, %arg3: memref<1x128xf32, #tpu.memory_space<vmem>>) attributes {dimension_semantics = [#tpu.dimension_semantics<parallel>], iteration_bounds = array<i64: 1>, scalar_prefetch = 0 : i64, scratch_operands = 0 : i64, tpu.core_type = #tpu.core_type<tc>, window_params = [{transform_indices = @transform_0, window_bounds = array<i64: 128, 32>}, {transform_indices = @transform_1, window_bounds = array<i64: 128, 1>}, {transform_indices = @transform_2, window_bounds = array<i64: 1, 128>}]} {
    %c0 = arith.constant 0 : index
    %c0_0 = arith.constant 0 : index
    %0 = vector.load %arg1[%c0, %c0_0] : memref<128x32xf32, #tpu.memory_space<vmem>>, vector<128x32xf32>
    %c0_1 = arith.constant 0 : index
    %c0_2 = arith.constant 0 : index
    %1 = vector.load %arg2[%c0_1, %c0_2] : memref<128x1xi32, #tpu.memory_space<vmem>>, vector<128x1xi32>
    %cst = arith.constant dense<0xFF800000> : vector<128xf32>
    %2 = vector.multi_reduction <maximumf>, %0, %cst [1] : vector<128x32xf32> to vector<128xf32>
    %3 = vector.shape_cast %2 : vector<128xf32> to vector<128x1xf32>
    %4 = vector.broadcast %3 : vector<128x1xf32> to vector<128x32xf32>
    %5 = arith.subf %0, %4 : vector<128x32xf32>
    %6 = math.exp %5 : vector<128x32xf32>
    %cst_3 = arith.constant dense<0.000000e+00> : vector<128xf32>
    %7 = vector.multi_reduction <add>, %6, %cst_3 [1] : vector<128x32xf32> to vector<128xf32>
    %8 = vector.shape_cast %7 : vector<128xf32> to vector<128x1xf32>
    %9 = math.log %8 : vector<128x1xf32>
    %10 = tpu.iota {dimensions = array<i32: 1>} : vector<128x32xi32>
    %11 = vector.broadcast %1 : vector<128x1xi32> to vector<128x32xi32>
    %12 = arith.cmpi eq, %10, %11 : vector<128x32xi32>
    %cst_4 = arith.constant 0.000000e+00 : f32
    %13 = vector.broadcast %cst_4 : f32 to vector<128x32xf32>
    %14 = arith.select %12, %5, %13 : vector<128x32xi1>, vector<128x32xf32>
    %cst_5 = arith.constant dense<0.000000e+00> : vector<128xf32>
    %15 = vector.multi_reduction <add>, %14, %cst_5 [1] : vector<128x32xf32> to vector<128xf32>
    %16 = vector.shape_cast %15 : vector<128xf32> to vector<128x1xf32>
    %17 = arith.subf %9, %16 : vector<128x1xf32>
    %cst_6 = arith.constant -0.699999988 : f32
    %18 = vector.broadcast %cst_6 : f32 to vector<128x1xf32>
    %19 = arith.mulf %18, %17 : vector<128x1xf32>
    %20 = math.exp %19 : vector<128x1xf32>
    %cst_7 = arith.constant 0.699999988 : f32
    %21 = vector.broadcast %cst_7 : f32 to vector<128x1xf32>
    %22 = arith.mulf %21, %20 : vector<128x1xf32>
    %23 = arith.mulf %17, %22 : vector<128x1xf32>
    %24 = tpu.iota {dimensions = array<i32: 0>} : vector<128x128xi32>
    %25 = tpu.iota {dimensions = array<i32: 1>} : vector<128x128xi32>
    %26 = arith.cmpi eq, %24, %25 : vector<128x128xi32>
    %cst_8 = arith.constant 0.000000e+00 : f32
    %27 = vector.shape_cast %23 : vector<128x1xf32> to vector<128x1xf32>
    %28 = vector.broadcast %27 : vector<128x1xf32> to vector<128x128xf32>
    %29 = vector.broadcast %cst_8 : f32 to vector<128x128xf32>
    %30 = arith.select %26, %28, %29 : vector<128x128xi1>, vector<128x128xf32>
    %cst_9 = arith.constant dense<0.000000e+00> : vector<128xf32>
    %31 = vector.multi_reduction <add>, %30, %cst_9 [0] : vector<128x128xf32> to vector<128xf32>
    %32 = vector.shape_cast %31 : vector<128xf32> to vector<1x128xf32>
    %c0_10 = arith.constant 0 : index
    %c0_11 = arith.constant 0 : index
    %33 = vector.load %arg3[%c0_10, %c0_11] : memref<1x128xf32, #tpu.memory_space<vmem>>, vector<1x128xf32>
    tpu.vector_store %arg3[%c0_10, %c0_11], %32 {strides = array<i32>} : memref<1x128xf32, #tpu.memory_space<vmem>>, vector<1x128xf32>,
    return
  }
  func.func @transform_0(%arg0: i32) -> (i32, i32) {
    %c0_i32 = arith.constant 0 : i32
    %c0_i32_0 = arith.constant 0 : i32
    return %arg0, %c0_i32 : i32, i32
  }
  func.func @transform_1(%arg0: i32) -> (i32, i32) {
    %c0_i32 = arith.constant 0 : i32
    %c0_i32_0 = arith.constant 0 : i32
    return %arg0, %c0_i32 : i32, i32
  }
  func.func @transform_2(%arg0: i32) -> (i32, i32) {
    %c0_i32 = arith.constant 0 : i32
    %c0_i32_0 = arith.constant 0 : i32
    return %c0_i32, %arg0 : i32, i32
  }
}

</mosaic_0001>

<bundles_post_ra>
// kernel: tpu_custom_call.1
= control target key start
LH: loop header
LB: loop body
LE: loop exit
PB: predicated region body
PF: predicated region fallthrough
CT: control target
= control target key end

     0   :  { %vm44_vm0 = vcmask 261120   ;;  %v656_v6 = vmov 0   ;;  %s1066_s0 = inlined_call_operand.vmem [shape: f32[128,32], index: 0, kind: input, shape index: {}]   ;;  %s1067_s1 = inlined_call_operand.vmem [shape: s32[128,1], index: 1, kind: input, shape index: {}]   ;;  %s1068_s2 = inlined_call_operand.hbm [shape: f32[1,128], index: 2, kind: output, shape index: {}]  }
   0x1   :  { %v676_v0 = vld [vmem:[%s1066_s0 + $0x10] sm:$0xff]  ;;  %v681_v1 = vld [vmem:[%s1066_s0] sm:$0xff]  ;;  %v686_v2 = vld [vmem:[%s1066_s0 + $0x18] sm:$0xff]  ;;  %535 = vset.pattern.permute.xlu1 %v656_v6  ;;  %534 = vset.pattern.permute.xlu0 %v656_v6 }
   0x2   :  { %v51_v3 = vsel %vm44_vm0, %v676_v0, -inf  ;;  %v45_v4 = vsel %vm44_vm0, %v681_v1, -inf  ;;  %v695_v5 = vld [vmem:[%s1066_s0 + $0x8] sm:$0xff]  ;;  %v54_v7 = vsel %vm44_vm0, %v686_v2, -inf  ;;  %v709_v10 = vld [vmem:[%s1066_s0 + $0x20] sm:$0xff]  ;;  %v718_v13 = vld [vmem:[%s1066_s0 + $0x38] sm:$0xff] }
   0x3   :  { %52 = vmax.xlane.f32.xlu1 %v51_v3  ;;  %46 = vmax.xlane.f32.xlu0 %v45_v4  ;;  %v48_v8 = vsel %vm44_vm0, %v695_v5, -inf  ;;  %v704_v9 = vld [vmem:[%s1066_s0 + $0x28] sm:$0xff]  ;;  %v57_v12 = vsel %vm44_vm0, %v709_v10, -inf  ;;  %v723_v14 = vld [vmem:[%s1066_s0 + $0x30] sm:$0xff] }
   0x4   :  { %v60_v11 = vsel %vm44_vm0, %v704_v9, -inf }
   0x7   :  { %55 = vmax.xlane.f32.xlu1 %v54_v7  ;;  %49 = vmax.xlane.f32.xlu0 %v48_v8 }
   0xb   :  { %61 = vmax.xlane.f32.xlu1 %v60_v11  ;;  %58 = vmax.xlane.f32.xlu0 %v57_v12 }
   0xc   :  { %7 = vsyncpa [#allocation3], 0  ;;  %v66_v15 = vsel %vm44_vm0, %v718_v13, -inf  ;;  %v63_v16 = vsel %vm44_vm0, %v723_v14, -inf  ;;  %v732_v17 = vld [vmem:[%s1066_s0 + $0x48] sm:$0xff]  ;;  %v737_v18 = vld [vmem:[%s1066_s0 + $0x40] sm:$0xff]  ;;  %v221_v63 = vlaneseq }
   0xd   :  { %v72_v19 = vsel %vm44_vm0, %v732_v17, -inf  ;;  %v69_v20 = vsel %vm44_vm0, %v737_v18, -inf  ;;  %v746_v21 = vld [vmem:[%s1066_s0 + $0x58] sm:$0xff]  ;;  %v751_v22 = vld [vmem:[%s1066_s0 + $0x50] sm:$0xff]  ;;  %v760_v25 = vld [vmem:[%s1066_s0 + $0x68] sm:$0xff] }
   0xe   :  { %v78_v23 = vsel %vm44_vm0, %v746_v21, -inf  ;;  %v75_v24 = vsel %vm44_vm0, %v751_v22, -inf  ;;  %v765_v26 = vld [vmem:[%s1066_s0 + $0x60] sm:$0xff]  ;;  %v84_v27 = vsel %vm44_vm0, %v760_v25, -inf  ;;  %v774_v29 = vld [vmem:[%s1066_s0 + $0x78] sm:$0xff]  ;;  %v779_v30 = vld [vmem:[%s1066_s0 + $0x70] sm:$0xff] }
   0xf   :  { %67 = vmax.xlane.f32.xlu1 %v66_v15  ;;  %64 = vmax.xlane.f32.xlu0 %v63_v16  ;;  %v81_v28 = vsel %vm44_vm0, %v765_v26, -inf  ;;  %v90_v31 = vsel %vm44_vm0, %v774_v29, -inf  ;;  %v87_v32 = vsel %vm44_vm0, %v779_v30, -inf  ;;  %v29_v33 = vld [vmem:[%s1067_s1 + $0x8] sm:$0xff]  ;;  %v30_v34 = vld [vmem:[%s1067_s1 + $0x10] sm:$0xff]  ;;  %v28_v35 = vld [vmem:[%s1067_s1] sm:$0xff] }
  0x10   :  { %v31_v36 = vld [vmem:[%s1067_s1 + $0x18] sm:$0xff]  ;;  %v37_v37 = vld [vmem:[%s1067_s1 + $0x48] sm:$0xff]  ;;  %v32_v38 = vld [vmem:[%s1067_s1 + $0x20] sm:$0xff]  ;;  %v846_v12 = vand.u32 127, %v221_v63 }
  0x11   :  { %v39_v39 = vld [vmem:[%s1067_s1 + $0x58] sm:$0xff]  ;;  %v33_v40 = vld [vmem:[%s1067_s1 + $0x28] sm:$0xff]  ;;  %v34_v42 = vld [vmem:[%s1067_s1 + $0x30] sm:$0xff] }
  0x12   :  { %v41_v41 = vld [vmem:[%s1067_s1 + $0x68] sm:$0xff]  ;;  %v43_v43 = vld [vmem:[%s1067_s1 + $0x78] sm:$0xff]  ;;  %v36_v45 = vld [vmem:[%s1067_s1 + $0x40] sm:$0xff] }
  0x13   :  { %73 = vmax.xlane.f32.xlu1 %v72_v19  ;;  %70 = vmax.xlane.f32.xlu0 %v69_v20  ;;  %v35_v44 = vld [vmem:[%s1067_s1 + $0x38] sm:$0xff]  ;;  %v38_v46 = vld [vmem:[%s1067_s1 + $0x50] sm:$0xff]  ;;  %v40_v47 = vld [vmem:[%s1067_s1 + $0x60] sm:$0xff] }
  0x14   :  { %v42_v48 = vld [vmem:[%s1067_s1 + $0x70] sm:$0xff]  ;;  %s657_s1 = smov [#allocation2]  }
  0x15   :  { %s524_s16 = sshll.u32 %s657_s1, 4  ;;  %s525_s16 = int_to_ptr.vmem [resolvable:$true] %s524_s16 }
  0x16   :  { %s632_s0 = scalar_lea.vmem %s525_s16, 16  ;;  %s636_s17 = scalar_lea.vmem %s525_s16, 32 }
  0x17   :  { %79 = vmax.xlane.f32.xlu1 %v78_v23  ;;  %76 = vmax.xlane.f32.xlu0 %v75_v24  ;;  %p633_p0 = scmp.ne.s32.totalorder %s525_s16, %s632_s0  ;;  %p637_p1 = scmp.lt.s32.totalorder %s525_s16, %s525_s16 }
  0x18   :  { %p638_p2 = scmp.lt.s32.totalorder %s636_s17, %s632_s0 }
  0x1a   :  { %p639_p3 = por %p638_p2, %p637_p1 }
  0x1b   :  { %85 = vmax.xlane.f32.xlu1 %v84_v27  ;;  %82 = vmax.xlane.f32.xlu0 %v81_v28 }
  0x1c   :  { %p640_p4 = pnand %p639_p3, %p633_p0 }
  0x1f   :  { %91 = vmax.xlane.f32.xlu1 %v90_v31  ;;  %88 = vmax.xlane.f32.xlu0 %v87_v32 }
  0x30   :  { %227 = vperm.xlu1 %535, %v29_v33  }
  0x34   :  { %230 = vperm.xlu1 %535, %v30_v34  }
  0x35   :  { %224 = vperm.xlu0 %534, %v28_v35  }
  0x38   :  { %233 = vperm.xlu1 %535, %v31_v36  }
  0x39   :  { %251 = vperm.xlu0 %534, %v37_v37  }
  0x3c   :  { %236 = vperm.xlu1 %535, %v32_v38  }
  0x3d   :  { %257 = vperm.xlu0 %534, %v39_v39  }
  0x40   :  { %239 = vperm.xlu1 %535, %v33_v40  }
  0x41   :  { %263 = vperm.xlu0 %534, %v41_v41  }
  0x44   :  { %242 = vperm.xlu1 %535, %v34_v42  }
  0x45   :  { %269 = vperm.xlu0 %534, %v43_v43  }
  0x48   :  { %245 = vperm.xlu1 %535, %v35_v44  }
  0x4c   :  { %248 = vperm.xlu1 %535, %v36_v45  }
  0x50   :  { %254 = vperm.xlu1 %535, %v38_v46  }
  0x54   :  { %260 = vperm.xlu1 %535, %v40_v47  }
  0x58   :  { %266 = vperm.xlu1 %535, %v42_v48  }
  0x90   :  { %v53_v49 = vpop.xlane.xlu1 %52  ;;  %v47_v50 = vpop.xlane.xlu0 %46 }
  0x91   :  { %v95_v3 = vsub.f32 %v676_v0, %v53_v49  ;;  %v93_v7 = vsub.f32 %v681_v1, %v47_v50 }
  0x93   :  { %v113_v15 = vmul.f32 1.442695, %v95_v3 }
  0x94   :  { %v56_v51 = vpop.xlane.xlu1 %55  ;;  %v50_v52 = vpop.xlane.xlu0 %49 }
  0x95   :  { %v94_v61 = vsub.f32 %v695_v5, %v50_v52  ;;  %v109_v5 = vmul.f32 1.442695, %v93_v7  ;;  %v96_v16 = vsub.f32 %v686_v2, %v56_v51 }
  0x97   :  { %v111_v4 = vmul.f32 1.442695, %v94_v61  ;;  %v115_v24 = vmul.f32 1.442695, %v96_v16 }
  0x98   :  { %v62_v53 = vpop.xlane.xlu1 %61  ;;  %v59_v54 = vpop.xlane.xlu0 %58 }
  0x99   :  { %v97_v11 = vsub.f32 %v709_v10, %v59_v54  ;;  %536 = vpow2.f32 %v111_v4  ;;  %v857_v2 = vsub.f32 %v704_v9, %v62_v53 }
  0x9a   :  { %538 = vpow2.f32 %v113_v15 }
  0x9b   :  { %v117_v20 = vmul.f32 1.442695, %v97_v11  ;;  %540 = vpow2.f32 %v109_v5  ;;  %v119_v9 = vmul.f32 1.442695, %v857_v2 }
  0x9c   :  { %v68_v55 = vpop.xlane.xlu1 %67  ;;  %v65_v56 = vpop.xlane.xlu0 %64 }
  0x9d   :  { %v853_v1 = vsub.f32 %v723_v14, %v65_v56  ;;  %542 = vpow2.f32 %v117_v20  ;;  %v869_v38 = vsub.f32 %v718_v13, %v68_v55 }
  0x9e   :  { %544 = vpow2.f32 %v115_v24 }
  0x9f   :  { %v121_v31 = vmul.f32 1.442695, %v853_v1  ;;  %v123_v13 = vmul.f32 1.442695, %v869_v38 }
  0xa0   :  { %v74_v57 = vpop.xlane.xlu1 %73  ;;  %v71_v58 = vpop.xlane.xlu0 %70 }
  0xa1   :  { %v863_v14 = vsub.f32 %v737_v18, %v71_v58  ;;  %546 = vpow2.f32 %v121_v31  ;;  %v873_v18 = vsub.f32 %v732_v17, %v74_v57 }
  0xa2   :  { %548 = vpow2.f32 %v119_v9 }
  0xa3   :  { %v537_v36 = vpop.eup %536  ;;  %v125_v39 = vmul.f32 1.442695, %v863_v14  ;;  %v127_v17 = vmul.f32 1.442695, %v873_v18 }
  0xa4   :  { %v833_v59 = vpop.xlane.xlu1 %79  ;;  %v77_v60 = vpop.xlane.xlu0 %76  ;;  %v144_v42 = vsel %vm44_vm0, %v537_v36, 0.0 }
  0xa5   :  { %v539_v43 = vpop.eup %538  ;;  %550 = vpow2.f32 %v125_v39  ;;  %v882_v46 = vsub.f32 %v751_v22, %v77_v60  ;;  %v888_v51 = vsub.f32 %v746_v21, %v833_v59 }
  0xa6   :  { %v541_v45 = vpop.eup %540  ;;  %v147_v50 = vsel %vm44_vm0, %v539_v43, 0.0  ;;  %552 = vpow2.f32 %v123_v13 }
  0xa7   :  { %v543_v48 = vpop.eup %542  ;;  %554 = vpow2.f32 %v127_v17  ;;  %v129_v52 = vmul.f32 1.442695, %v882_v46  ;;  %v141_v22 = vsel %vm44_vm0, %v541_v45, 0.0  ;;  %v131_v57 = vmul.f32 1.442695, %v888_v51 }
  0xa8   :  { %v836_v62 = vpop.xlane.xlu1 %85  ;;  %v839_v6 = vpop.xlane.xlu0 %82  ;;  %v153_v54 = vsel %vm44_vm0, %v543_v48, 0.0 }
  0xa9   :  { %v545_v53 = vpop.eup %544  ;;  %556 = vpow2.f32 %v129_v52  ;;  %v896_v58 = vsub.f32 %v765_v26, %v839_v6 }
  0xaa   :  { %v150_v59 = vsel %vm44_vm0, %v545_v53, 0.0  ;;  %558 = vpow2.f32 %v131_v57 }
  0xab   :  { %v547_v55 = vpop.eup %546  ;;  %v133_v4 = vmul.f32 1.442695, %v896_v58 }
  0xac   :  { %v842_v8 = vpop.xlane.xlu1 %91  ;;  %v849_v19 = vpop.xlane.xlu0 %88  ;;  %v159_v60 = vsel %vm44_vm0, %v547_v55, 0.0 }
  0xad   :  { %v549_v21 = vpop.eup %548  ;;  %560 = vpow2.f32 %v133_v4 }
  0xae   :  { %v156_v26 = vsel %vm44_vm0, %v549_v21, 0.0 }
  0xb0   :  { %v228_v0 = vpop.permute.xlu1 %227 }
  0xb1   :  { %vm272_vm1 = vcmp.eq.s32.totalorder %v846_v12, %v228_v0 }
  0xb2   :  { %v288_v23 = vsel %vm272_vm1, %v94_v61, 0.0  ;;  %v551_v61 = vpop.eup %550 }
  0xb3   :  { %v306_v10 = vsel %vm44_vm0, %v288_v23, 0.0  ;;  %v165_v6 = vsel %vm44_vm0, %v551_v61, 0.0 }
  0xb4   :  { %v231_v27 = vpop.permute.xlu1 %230  ;;  %307 = vadd.xlane.f32.xlu1 %v306_v10  ;;  %v225_v28 = vpop.permute.xlu0 %224  ;;  %v108_v10 = vsub.f32 %v774_v29, %v842_v8 }
  0xb5   :  { %vm273_vm2 = vcmp.eq.s32.totalorder %v846_v12, %v231_v27  ;;  %vm271_vm3 = vcmp.eq.s32.totalorder %v846_v12, %v225_v28 }
  0xb6   :  { %v289_v32 = vsel %vm273_vm2, %v95_v3, 0.0  ;;  %v287_v33 = vsel %vm271_vm3, %v93_v7, 0.0  ;;  %v902_v3 = vsub.f32 %v760_v25, %v836_v62  ;;  %v911_v25 = vsub.f32 %v779_v30, %v849_v19 }
  0xb7   :  { %v309_v34 = vsel %vm44_vm0, %v289_v32, 0.0  ;;  %v303_v35 = vsel %vm44_vm0, %v287_v33, 0.0 }
  0xb8   :  { %v234_v37 = vpop.permute.xlu1 %233  ;;  %310 = vadd.xlane.f32.xlu1 %v309_v34  ;;  %304 = vadd.xlane.f32.xlu0 %v303_v35  ;;  %v135_v5 = vmul.f32 1.442695, %v902_v3  ;;  %v137_v24 = vmul.f32 1.442695, %v911_v25  ;;  %v252_v28 = vpop.permute.xlu0 %251 }
  0xb9   :  { %vm274_vm4 = vcmp.eq.s32.totalorder %v846_v12, %v234_v37  ;;  %vm280_vm10 = vcmp.eq.s32.totalorder %v846_v12, %v252_v28 }
  0xba   :  { %v290_v40 = vsel %vm274_vm4, %v96_v16, 0.0  ;;  %562 = vpow2.f32 %v135_v5  ;;  %v296_v43 = vsel %vm280_vm10, %v873_v18, 0.0 }
  0xbb   :  { %v312_v41 = vsel %vm44_vm0, %v290_v40, 0.0  ;;  %564 = vpow2.f32 %v137_v24  ;;  %v330_v13 = vsel %vm44_vm0, %v296_v43, 0.0 }
  0xbc   :  { %v237_v44 = vpop.permute.xlu1 %236  ;;  %313 = vadd.xlane.f32.xlu1 %v312_v41  ;;  %145 = vadd.xlane.f32.xlu0 %v144_v42  ;;  %v258_v35 = vpop.permute.xlu0 %257 }
  0xbd   :  { %vm275_vm5 = vcmp.eq.s32.totalorder %v846_v12, %v237_v44  ;;  %vm282_vm11 = vcmp.eq.s32.totalorder %v846_v12, %v258_v35 }
  0xbe   :  { %v291_v47 = vsel %vm275_vm5, %v97_v11, 0.0  ;;  %v553_v11 = vpop.eup %552  ;;  %v298_v17 = vsel %vm282_vm11, %v888_v51, 0.0 }
  0xbf   :  { %v315_v49 = vsel %vm44_vm0, %v291_v47, 0.0  ;;  %v555_v15 = vpop.eup %554  ;;  %v162_v62 = vsel %vm44_vm0, %v553_v11, 0.0  ;;  %v336_v18 = vsel %vm44_vm0, %v298_v17, 0.0 }
  0xc0   :  { %316 = vadd.xlane.f32.xlu1 %v315_v49  ;;  %148 = vadd.xlane.f32.xlu0 %v147_v50  ;;  %v240_v56 = vpop.permute.xlu1 %239  ;;  %v168_v16 = vsel %vm44_vm0, %v555_v15, 0.0  ;;  %v557_v0 = vpop.eup %556 }
  0xc1   :  { %vm276_vm6 = vcmp.eq.s32.totalorder %v846_v12, %v240_v56  ;;  %v171_v19 = vsel %vm44_vm0, %v557_v0, 0.0  ;;  %v559_v27 = vpop.eup %558  ;;  %v264_v42 = vpop.permute.xlu0 %263 }
  0xc2   :  { %v292_v23 = vsel %vm276_vm6, %v857_v2, 0.0  ;;  %v139_v2 = vmul.f32 1.442695, %v108_v10  ;;  %v174_v29 = vsel %vm44_vm0, %v559_v27, 0.0  ;;  %v561_v8 = vpop.eup %560  ;;  %vm284_vm12 = vcmp.eq.s32.totalorder %v846_v12, %v264_v42 }
  0xc3   :  { %v318_v30 = vsel %vm44_vm0, %v292_v23, 0.0  ;;  %v177_v36 = vsel %vm44_vm0, %v561_v8, 0.0  ;;  %v300_v50 = vsel %vm284_vm12, %v902_v3, 0.0 }
  0xc4   :  { %142 = vadd.xlane.f32.xlu1 %v141_v22  ;;  %154 = vadd.xlane.f32.xlu0 %v153_v54  ;;  %v243_v7 = vpop.permute.xlu1 %242  ;;  %566 = vpow2.f32 %v139_v2  ;;  %v563_v37 = vpop.eup %562  ;;  %v342_v53 = vsel %vm44_vm0, %v300_v50, 0.0 }
  0xc5   :  { %vm277_vm7 = vcmp.eq.s32.totalorder %v846_v12, %v243_v7  ;;  %v565_v41 = vpop.eup %564  ;;  %v270_v47 = vpop.permute.xlu0 %269 }
  0xc6   :  { %v293_v31 = vsel %vm277_vm7, %v853_v1, 0.0  ;;  %v183_v44 = vsel %vm44_vm0, %v565_v41, 0.0  ;;  %vm286_vm14 = vcmp.eq.s32.totalorder %v846_v12, %v270_v47 }
  0xc7   :  { %v321_v33 = vsel %vm44_vm0, %v293_v31, 0.0  ;;  %v302_v54 = vsel %vm286_vm14, %v108_v10, 0.0 }
  0xc8   :  { %151 = vadd.xlane.f32.xlu1 %v150_v59  ;;  %160 = vadd.xlane.f32.xlu0 %v159_v60  ;;  %v246_v20 = vpop.permute.xlu1 %245  ;;  %v348_v55 = vsel %vm44_vm0, %v302_v54, 0.0 }
  0xc9   :  { %vm278_vm8 = vcmp.eq.s32.totalorder %v846_v12, %v246_v20 }
  0xca   :  { %v294_v34 = vsel %vm278_vm8, %v869_v38, 0.0  ;;  %v180_v38 = vsel %vm44_vm0, %v563_v37, 0.0 }
  0xcb   :  { %v324_v1 = vsel %vm44_vm0, %v294_v34, 0.0 }
  0xcc   :  { %157 = vadd.xlane.f32.xlu1 %v156_v26  ;;  %166 = vadd.xlane.f32.xlu0 %v165_v6  ;;  %v249_v32 = vpop.permute.xlu1 %248 }
  0xcd   :  { %vm279_vm9 = vcmp.eq.s32.totalorder %v846_v12, %v249_v32 }
  0xce   :  { %v295_v9 = vsel %vm279_vm9, %v863_v14, 0.0  ;;  %v567_v14 = vpop.eup %566 }
  0xcf   :  { %v327_v40 = vsel %vm44_vm0, %v295_v9, 0.0  ;;  %v186_v48 = vsel %vm44_vm0, %v567_v14, 0.0 }
  0xd0   :  { %163 = vadd.xlane.f32.xlu1 %v162_v62  ;;  %169 = vadd.xlane.f32.xlu0 %v168_v16  ;;  %v255_v39 = vpop.permute.xlu1 %254 }
  0xd1   :  { %vm281_vm13 = vcmp.eq.s32.totalorder %v846_v12, %v255_v39 }
  0xd2   :  { %v297_v49 = vsel %vm281_vm13, %v882_v46, 0.0 }
  0xd3   :  { %v333_v52 = vsel %vm44_vm0, %v297_v49, 0.0 }
  0xd4   :  { %319 = vadd.xlane.f32.xlu1 %v318_v30  ;;  %172 = vadd.xlane.f32.xlu0 %v171_v19  ;;  %v261_v45 = vpop.permute.xlu1 %260 }
  0xd5   :  { %vm283_vm15 = vcmp.eq.s32.totalorder %v846_v12, %v261_v45 }
  0xd6   :  { %v299_v22 = vsel %vm283_vm15, %v896_v58, 0.0 }
  0xd7   :  { %v339_v46 = vsel %vm44_vm0, %v299_v22, 0.0 }
  0xd8   :  { %322 = vadd.xlane.f32.xlu1 %v321_v33  ;;  %175 = vadd.xlane.f32.xlu0 %v174_v29  ;;  %v267_v51 = vpop.permute.xlu1 %266 }
  0xd9   :  { %vm285_vm1 = vcmp.eq.s32.totalorder %v846_v12, %v267_v51 }
  0xda   :  { %v301_v56 = vsel %vm285_vm1, %v911_v25, 0.0 }
  0xdb   :  { %v345_v57 = vsel %vm44_vm0, %v301_v56, 0.0 }
  0xdc   :  { %325 = vadd.xlane.f32.xlu1 %v324_v1  ;;  %178 = vadd.xlane.f32.xlu0 %v177_v36 }
  0xe0   :  { %328 = vadd.xlane.f32.xlu1 %v327_v40  ;;  %181 = vadd.xlane.f32.xlu0 %v180_v38 }
  0xe4   :  { %184 = vadd.xlane.f32.xlu0 %v183_v44  ;;  %331 = vadd.xlane.f32.xlu1 %v330_v13 }
  0xe8   :  { %187 = vadd.xlane.f32.xlu0 %v186_v48  ;;  %337 = vadd.xlane.f32.xlu1 %v336_v18  ;;  %v973_v48 = vshrl.u32 %v221_v63, 7 }
  0xea   :  { %v449_v63 = vadd.s32 8, %v973_v48  ;;  %vm464_vm3 = vcmp.eq.s32.totalorder %v973_v48, %v846_v12 }
  0xec   :  { %334 = vadd.xlane.f32.xlu0 %v333_v52  ;;  %343 = vadd.xlane.f32.xlu1 %v342_v53  ;;  %vm465_vm0 = vcmp.eq.s32.totalorder %v449_v63, %v846_v12 }
  0xf0   :  { %340 = vadd.xlane.f32.xlu0 %v339_v46  ;;  %349 = vadd.xlane.f32.xlu1 %v348_v55 }
  0xf4   :  { %346 = vadd.xlane.f32.xlu0 %v345_v57 }
 0x141   :  { %v308_v21 = vpop.xlane.xlu1 %307 }
 0x145   :  { %v311_v59 = vpop.xlane.xlu1 %310  ;;  %v305_v60 = vpop.xlane.xlu0 %304 }
 0x149   :  { %v314_v61 = vpop.xlane.xlu1 %313  ;;  %v146_v3 = vpop.xlane.xlu0 %145 }
 0x14a   :  { %568 = vlog2.f32 %v146_v3 }
 0x14d   :  { %v317_v58 = vpop.xlane.xlu1 %316  ;;  %v149_v4 = vpop.xlane.xlu0 %148 }
 0x14e   :  { %570 = vlog2.f32 %v149_v4 }
 0x151   :  { %v143_v7 = vpop.xlane.xlu1 %142  ;;  %v155_v11 = vpop.xlane.xlu0 %154 }
 0x152   :  { %572 = vlog2.f32 %v143_v7 }
 0x153   :  { %574 = vlog2.f32 %v155_v11 }
 0x154   :  { %v569_v26 = vpop.eup %568 }
 0x155   :  { %v192_v6 = vmul.f32 0.6931472, %v569_v26  ;;  %v152_v15 = vpop.xlane.xlu1 %151  ;;  %v161_v5 = vpop.xlane.xlu0 %160 }
 0x156   :  { %576 = vlog2.f32 %v152_v15 }
 0x157   :  { %v955_v25 = vsub.f32 %v192_v6, %v308_v21  ;;  %578 = vlog2.f32 %v161_v5 }
 0x158   :  { %v571_v62 = vpop.eup %570 }
 0x159   :  { %v368_v16 = vmul.f32 -0.7, %v955_v25  ;;  %v194_v0 = vmul.f32 0.6931472, %v571_v62  ;;  %v158_v20 = vpop.xlane.xlu1 %157  ;;  %v167_v23 = vpop.xlane.xlu0 %166 }
 0x15a   :  { %580 = vlog2.f32 %v158_v20 }
 0x15b   :  { %v385_v10 = vmul.f32 1.442695, %v368_v16  ;;  %v958_v24 = vsub.f32 %v194_v0, %v311_v59 }
 0x15c   :  { %v573_v30 = vpop.eup %572 }
 0x15d   :  { %v575_v19 = vpop.eup %574  ;;  %582 = vpow2.f32 %v385_v10  ;;  %v369_v27 = vmul.f32 -0.7, %v958_v24  ;;  %v190_v28 = vmul.f32 0.6931472, %v573_v30  ;;  %v164_v31 = vpop.xlane.xlu1 %163  ;;  %v451_v30 = vadd.s32 24, %v973_v48 }
 0x15e   :  { %v170_v2 = vpop.xlane.xlu0 %169  ;;  %v198_v32 = vmul.f32 0.6931472, %v575_v19  ;;  %584 = vlog2.f32 %v164_v31 }
 0x15f   :  { %v387_v33 = vmul.f32 1.442695, %v369_v27  ;;  %v961_v29 = vsub.f32 %v190_v28, %v305_v60  ;;  %586 = vlog2.f32 %v167_v23  ;;  %v450_v60 = vadd.s32 16, %v973_v48 }
 0x160   :  { %v577_v8 = vpop.eup %576  ;;  %v963_v34 = vsub.f32 %v198_v32, %v317_v58  ;;  %v452_v28 = vadd.s32 32, %v973_v48  ;;  %vm467_vm4 = vcmp.eq.s32.totalorder %v451_v30, %v846_v12 }
 0x161   :  { %v579_v35 = vpop.eup %578  ;;  %588 = vpow2.f32 %v387_v33  ;;  %v367_v1 = vmul.f32 -0.7, %v961_v29  ;;  %v196_v36 = vmul.f32 0.6931472, %v577_v8  ;;  %v320_v37 = vpop.xlane.xlu1 %319  ;;  %vm466_vm2 = vcmp.eq.s32.totalorder %v450_v60, %v846_v12 }
 0x162   :  { %v173_v9 = vpop.xlane.xlu0 %172  ;;  %v371_v39 = vmul.f32 -0.7, %v963_v34  ;;  %590 = vlog2.f32 %v170_v2  ;;  %v202_v43 = vmul.f32 0.6931472, %v579_v35  ;;  %vm468_vm5 = vcmp.eq.s32.totalorder %v452_v28, %v846_v12 }
 0x163   :  { %v383_v40 = vmul.f32 1.442695, %v367_v1  ;;  %v967_v38 = vsub.f32 %v196_v36, %v314_v61  ;;  %v454_v60 = vadd.s32 48, %v973_v48 }
 0x164   :  { %v581_v41 = vpop.eup %580  ;;  %v391_v42 = vmul.f32 1.442695, %v371_v39  ;;  %v453_v39 = vadd.s32 40, %v973_v48 }
 0x165   :  { %592 = vpow2.f32 %v383_v40  ;;  %v370_v44 = vmul.f32 -0.7, %v967_v38  ;;  %v200_v13 = vmul.f32 0.6931472, %v581_v41  ;;  %v323_v14 = vpop.xlane.xlu1 %322  ;;  %vm470_vm7 = vcmp.eq.s32.totalorder %v454_v60, %v846_v12 }
 0x166   :  { %v176_v45 = vpop.xlane.xlu0 %175  ;;  %594 = vpow2.f32 %v391_v42  ;;  %v970_v17 = vsub.f32 %v202_v43, %v323_v14  ;;  %vm469_vm6 = vcmp.eq.s32.totalorder %v453_v39, %v846_v12 }
 0x167   :  { %v583_v47 = vpop.eup %582  ;;  %v389_v18 = vmul.f32 1.442695, %v370_v44  ;;  %v975_v49 = vsub.f32 %v200_v13, %v320_v37  ;;  %596 = vlog2.f32 %v176_v45 }
 0x168   :  { %v585_v50 = vpop.eup %584  ;;  %v373_v51 = vmul.f32 -0.7, %v970_v17  ;;  %v416_v57 = vmul.f32 0.7, %v583_v47 }
 0x169   :  { %v587_v52 = vpop.eup %586  ;;  %598 = vpow2.f32 %v389_v18  ;;  %v372_v53 = vmul.f32 -0.7, %v975_v49  ;;  %v204_v22 = vmul.f32 0.6931472, %v585_v50  ;;  %v326_v54 = vpop.xlane.xlu1 %325 }
 0x16a   :  { %v179_v46 = vpop.xlane.xlu0 %178  ;;  %600 = vlog2.f32 %v173_v9  ;;  %v395_v55 = vmul.f32 1.442695, %v373_v51  ;;  %v206_v61 = vmul.f32 0.6931472, %v587_v52  ;;  %v432_v15 = vmul.f32 %v416_v57, %v955_v25 }
 0x16b   :  { %v589_v56 = vpop.eup %588  ;;  %v393_v21 = vmul.f32 1.442695, %v372_v53  ;;  %v980_v59 = vsub.f32 %v204_v22, %v326_v54 }
 0x16c   :  { %602 = vpow2.f32 %v395_v55  ;;  %v591_v3 = vpop.eup %590  ;;  %v417_v58 = vmul.f32 0.7, %v589_v56  ;;  %v481_v33 = vsel %vm465_vm0, %v432_v15, 0.0 }
 0x16d   :  { %604 = vpow2.f32 %v393_v21  ;;  %v374_v4 = vmul.f32 -0.7, %v980_v59  ;;  %v329_v7 = vpop.xlane.xlu1 %328  ;;  %v208_v20 = vmul.f32 0.6931472, %v591_v3 }
 0x16e   :  { %v182_v11 = vpop.xlane.xlu0 %181  ;;  %v984_v26 = vsub.f32 %v206_v61, %v329_v7  ;;  %v433_v10 = vmul.f32 %v417_v58, %v958_v24 }
 0x16f   :  { %606 = vlog2.f32 %v182_v11  ;;  %v593_v6 = vpop.eup %592  ;;  %v397_v5 = vmul.f32 1.442695, %v374_v4 }
 0x170   :  { %608 = vlog2.f32 %v179_v46  ;;  %v595_v62 = vpop.eup %594  ;;  %v415_v16 = vmul.f32 0.7, %v593_v6  ;;  %v375_v0 = vmul.f32 -0.7, %v984_v26 }
 0x171   :  { %v597_v23 = vpop.eup %596  ;;  %610 = vpow2.f32 %v397_v5  ;;  %v332_v19 = vpop.xlane.xlu1 %331  ;;  %v419_v24 = vmul.f32 0.7, %v595_v62 }
 0x172   :  { %v185_v25 = vpop.xlane.xlu0 %184  ;;  %v431_v27 = vmul.f32 %v415_v16, %v961_v29  ;;  %v399_v31 = vmul.f32 1.442695, %v375_v0  ;;  %v996_v2 = vsub.f32 %v208_v20, %v332_v19  ;;  %v212_v8 = vmul.f32 0.6931472, %v597_v23 }
 0x173   :  { %v599_v32 = vpop.eup %598  ;;  %612 = vlog2.f32 %v185_v25  ;;  %v482_v29 = vsel %vm466_vm2, %v433_v10, 0.0  ;;  %v435_v45 = vmul.f32 %v419_v24, %v963_v34  ;;  %v455_v16 = vadd.s32 56, %v973_v48 }
 0x174   :  { %v601_v35 = vpop.eup %600  ;;  %v480_v1 = vsel %vm464_vm3, %v431_v27, 0.0  ;;  %v418_v36 = vmul.f32 0.7, %v599_v32  ;;  %614 = vpow2.f32 %v399_v31  ;;  %v376_v37 = vmul.f32 -0.7, %v996_v2 }
 0x175   :  { %v496_v9 = vadd.f32 %v481_v33, %v480_v1  ;;  %v338_v40 = vpop.xlane.xlu1 %337  ;;  %v210_v18 = vmul.f32 0.6931472, %v601_v35  ;;  %v484_v21 = vsel %vm468_vm5, %v435_v45, 0.0  ;;  %vm471_vm8 = vcmp.eq.s32.totalorder %v455_v16, %v846_v12 }
 0x176   :  { %v188_v41 = vpop.xlane.xlu0 %187  ;;  %v603_v42 = vpop.eup %602  ;;  %v434_v43 = vmul.f32 %v418_v36, %v967_v38  ;;  %v401_v44 = vmul.f32 1.442695, %v376_v37  ;;  %v1006_v13 = vsub.f32 %v212_v8, %v338_v40  ;;  %v456_v8 = vadd.s32 64, %v973_v48 }
 0x177   :  { %616 = vlog2.f32 %v188_v41  ;;  %v605_v14 = vpop.eup %604  ;;  %v497_v47 = vadd.f32 %v496_v9, %v482_v29  ;;  %v421_v61 = vmul.f32 0.7, %v603_v42 }
 0x178   :  { %v483_v51 = vsel %vm467_vm4, %v434_v43, 0.0  ;;  %v420_v52 = vmul.f32 0.7, %v605_v14  ;;  %618 = vpow2.f32 %v401_v44  ;;  %v378_v53 = vmul.f32 -0.7, %v1006_v13 }
 0x179   :  { %v607_v50 = vpop.eup %606  ;;  %v498_v54 = vadd.f32 %v497_v47, %v483_v51  ;;  %v344_v38 = vpop.xlane.xlu1 %343  ;;  %v437_v23 = vmul.f32 %v421_v61, %v970_v17  ;;  %vm472_vm9 = vcmp.eq.s32.totalorder %v456_v8, %v846_v12 }
 0x17a   :  { %v609_v22 = vpop.eup %608  ;;  %v216_v46 = vmul.f32 0.6931472, %v607_v50  ;;  %v335_v55 = vpop.xlane.xlu0 %334  ;;  %v436_v56 = vmul.f32 %v420_v52, %v975_v49  ;;  %v405_v34 = vmul.f32 1.442695, %v378_v53 }
 0x17b   :  { %v1013_v63 = vsub.f32 %v210_v18, %v335_v55  ;;  %v611_v57 = vpop.eup %610  ;;  %v499_v58 = vadd.f32 %v498_v54, %v484_v21  ;;  %v214_v7 = vmul.f32 0.6931472, %v609_v22  ;;  %v486_v36 = vsel %vm470_vm7, %v437_v23, 0.0 }
 0x17c   :  { %v1018_v3 = vsub.f32 %v216_v46, %v344_v38  ;;  %620 = vpow2.f32 %v405_v34  ;;  %v485_v6 = vsel %vm469_vm6, %v436_v56, 0.0  ;;  %v422_v49 = vmul.f32 0.7, %v611_v57 }
 0x17d   :  { %v377_v4 = vmul.f32 -0.7, %v1013_v63  ;;  %v613_v11 = vpop.eup %612  ;;  %v500_v19 = vadd.f32 %v499_v58, %v485_v6  ;;  %v350_v35 = vpop.xlane.xlu1 %349  ;;  %v458_v18 = vadd.s32 80, %v973_v48  ;;  %v461_v21 = vadd.s32 104, %v973_v48 }
 0x17e   :  { %v380_v15 = vmul.f32 -0.7, %v1018_v3  ;;  %v341_v5 = vpop.xlane.xlu0 %340  ;;  %v615_v62 = vpop.eup %614  ;;  %v218_v27 = vmul.f32 0.6931472, %v613_v11  ;;  %v438_v28 = vmul.f32 %v422_v49, %v980_v59  ;;  %v457_v59 = vadd.s32 72, %v973_v48 }
 0x17f   :  { %v403_v0 = vmul.f32 1.442695, %v377_v4  ;;  %v1023_v20 = vsub.f32 %v214_v7, %v341_v5  ;;  %v423_v31 = vmul.f32 0.7, %v615_v62  ;;  %v501_v9 = vadd.f32 %v500_v19, %v486_v36 }
 0x180   :  { %v409_v10 = vmul.f32 1.442695, %v380_v15  ;;  %v487_v40 = vsel %vm471_vm8, %v438_v28, 0.0  ;;  %vm473_vm10 = vcmp.eq.s32.totalorder %v457_v59, %v846_v12  ;;  %vm474_vm11 = vcmp.eq.s32.totalorder %v458_v18, %v846_v12 }
 0x181   :  { %v617_v30 = vpop.eup %616  ;;  %622 = vpow2.f32 %v403_v0  ;;  %v379_v25 = vmul.f32 -0.7, %v1023_v20  ;;  %v439_v41 = vmul.f32 %v423_v31, %v984_v26  ;;  %v502_v47 = vadd.f32 %v501_v9, %v487_v40 }
 0x182   :  { %624 = vpow2.f32 %v409_v10  ;;  %v220_v32 = vmul.f32 0.6931472, %v617_v30  ;;  %v347_v33 = vpop.xlane.xlu0 %346  ;;  %v619_v24 = vpop.eup %618  ;;  %v459_v26 = vadd.s32 88, %v973_v48  ;;  %v462_v4 = vadd.s32 112, %v973_v48 }
 0x183   :  { %v407_v17 = vmul.f32 1.442695, %v379_v25  ;;  %v365_v1 = vsub.f32 %v218_v27, %v347_v33  ;;  %v424_v37 = vmul.f32 0.7, %v619_v24  ;;  %v488_v50 = vsel %vm472_vm9, %v439_v41, 0.0 }
 0x184   :  { %v366_v29 = vsub.f32 %v220_v32, %v350_v35  ;;  %v503_v38 = vadd.f32 %v502_v47, %v488_v50  ;;  %vm475_vm12 = vcmp.eq.s32.totalorder %v459_v26, %v846_v12  ;;  %vm477_vm14 = vcmp.eq.s32.totalorder %v461_v21, %v846_v12 }
 0x185   :  { %626 = vpow2.f32 %v407_v17  ;;  %v381_v39 = vmul.f32 -0.7, %v365_v1  ;;  %v440_v14 = vmul.f32 %v424_v37, %v996_v2  ;;  %v460_v2 = vadd.s32 96, %v973_v48 }
 0x186   :  { %v382_v42 = vmul.f32 -0.7, %v366_v29  ;;  %v621_v43 = vpop.eup %620  ;;  %vm478_vm15 = vcmp.eq.s32.totalorder %v462_v4, %v846_v12 }
 0x187   :  { %v411_v44 = vmul.f32 1.442695, %v381_v39  ;;  %v426_v51 = vmul.f32 0.7, %v621_v43  ;;  %v489_v22 = vsel %vm473_vm10, %v440_v14, 0.0  ;;  %vm476_vm13 = vcmp.eq.s32.totalorder %v460_v2, %v846_v12 }
 0x188   :  { %v413_v45 = vmul.f32 1.442695, %v382_v42  ;;  %v504_v57 = vadd.f32 %v503_v38, %v489_v22 }
 0x189   :  { %628 = vpow2.f32 %v411_v44  ;;  %v442_v46 = vmul.f32 %v426_v51, %v1006_v13  ;;  %v463_v13 = vadd.s32 120, %v973_v48 }
 0x18a   :  { %630 = vpow2.f32 %v413_v45 }
 0x18b   :  { %v623_v52 = vpop.eup %622  ;;  %v491_v7 = vsel %vm475_vm12, %v442_v46, 0.0  ;;  %vm479_vm1 = vcmp.eq.s32.totalorder %v463_v13, %v846_v12 }
 0x18c   :  { %v625_v53 = vpop.eup %624  ;;  %v425_v54 = vmul.f32 0.7, %v623_v52 }
 0x18d   :  { %v428_v55 = vmul.f32 0.7, %v625_v53 }
 0x18e   :  { %v441_v56 = vmul.f32 %v425_v54, %v1013_v63 }
 0x18f   :  { %v627_v34 = vpop.eup %626  ;;  %v444_v11 = vmul.f32 %v428_v55, %v1018_v3 }
 0x190   :  { %v490_v60 = vsel %vm474_vm11, %v441_v56, 0.0  ;;  %v427_v61 = vmul.f32 0.7, %v627_v34 }
 0x191   :  { %v505_v58 = vadd.f32 %v504_v57, %v490_v60  ;;  %v493_v23 = vsel %vm477_vm14, %v444_v11, 0.0 }
 0x192   :  { %v443_v63 = vmul.f32 %v427_v61, %v1023_v20 }
 0x193   :  { %v629_v6 = vpop.eup %628  ;;  %v506_v49 = vadd.f32 %v505_v58, %v491_v7 }
 0x194   :  { %v631_v15 = vpop.eup %630  ;;  %v492_v5 = vsel %vm476_vm13, %v443_v63, 0.0  ;;  %v429_v62 = vmul.f32 0.7, %v629_v6 }
 0x195   :  { %v430_v16 = vmul.f32 0.7, %v631_v15  ;;  %v507_v0 = vadd.f32 %v506_v49, %v492_v5 }
 0x196   :  { %v445_v10 = vmul.f32 %v429_v62, %v365_v1 }
 0x197   :  { %v446_v3 = vmul.f32 %v430_v16, %v366_v29  ;;  %v508_v30 = vadd.f32 %v507_v0, %v493_v23 }
 0x198   :  { %v494_v48 = vsel %vm478_vm15, %v445_v10, 0.0 }
 0x199   :  { %v495_v19 = vsel %vm479_vm1, %v446_v3, 0.0  ;;  %v509_v20 = vadd.f32 %v508_v30, %v494_v48 }
 0x19b   :  { %v510_v25 = vadd.f32 %v509_v20, %v495_v19 }
 0x19d   :  { %v511_v27 = vrot.slane %v510_v25, 4 }
 0x19f   :  { %v512_v28 = vadd.f32 %v511_v27, %v510_v25 }
 0x1a1   :  { %v513_v31 = vrot.slane %v512_v28, 2 }
 0x1a3   :  { %v514_v32 = vadd.f32 %v513_v31, %v512_v28 }
 0x1a5   :  { %v515_v33 = vrot.slane %v514_v32, 1 }
 0x1a7   :  { %v516_v24 = vadd.f32 %v515_v33, %v514_v32 }
 0x1a9   :  { %517 = vst [vmem:[#allocation2] sm:$0x1] %v516_v24 }
 0x1aa   :  { %643 = shalt.err (!%p640_p4)
}
 0x1ab   :  { %s644_s20 = scalar_lea.hbm %s1068_s2, 16 }
 0x1ac   :  { %p645_p5 = scmp.ne.s32.totalorder %s1068_s2, %s644_s20  ;;  %p648_p6 = scmp.lt.u32.totalorder %s644_s20, %s1068_s2 }
 0x1ae   :  { %p650_p7 = pnand %p648_p6, %p645_p5 }
 0x1b0   :  { %653 = shalt.err (!%p650_p7)
}
 0x1b1   :  { %527 = dma.vmem_to_hbm [thread:$0]  %s525_s16, 16, %s1068_s2, [#allocation3]  }
 0x1b2   :  { %654 = dma.done.wait [#allocation3], 16  }
 0x1b3   :  { %655 = vsyncadd [#allocation3], 4294967280 }
 0x1b4   :  { %531 = vsyncpa [#allocation3], 1 }

</bundles_post_ra>
